<compile_context>
chip_gen: v6e
topology: v6e:2x2x1
jax: 0.10.0
libtpu: 0.0.40
codegen_flags: <defaults>
</compile_context>

<pallas_src>
import functools

import jax
import jax.numpy as jnp
from jax.experimental import pallas as pl
from jax.experimental.pallas import tpu as pltpu


def cam_kernel(x_ref, w_hbm, b_ref, o_ref,
               w_vmem, w_sem, sum_acc, max_acc, *, hw_total):
    # x_ref:   (n_blk, C, tile_hw)  current activation tile (VMEM)
    # w_hbm:   (2, C, C)            fused 1x1-conv weight, left in HBM
    # b_ref:   (1, C)               bias
    # o_ref:   (n_blk, C)           output block
    # scratch: w_vmem (2,C,C), DMA sem, sum_acc/max_acc (n_blk, C) f32
    k = pl.program_id(1)
    k_last = pl.num_programs(1) - 1

    @pl.when(k == 0)
    def _():
        sum_acc[...] = jnp.zeros_like(sum_acc)
        max_acc[...] = jnp.full_like(max_acc, -jnp.inf)
        # Single-buffered weight copy; overlapped with the HW streaming loop.
        pltpu.make_async_copy(w_hbm, w_vmem, w_sem).start()

    x = x_ref[...]                      # keep input dtype (no full-tile upcast)
    tile = x.shape[-1]

    if hw_total % tile != 0:
        # Remainder tile: mask padded lanes (0 for sum, -inf for max).
        lane = jax.lax.broadcasted_iota(jnp.int32, x.shape, dimension=2)
        valid = (k * tile + lane) < hw_total
        x_sum = jnp.where(valid, x, jnp.array(0, dtype=x.dtype))
        x_max = jnp.where(valid, x, jnp.array(-jnp.inf, dtype=x.dtype))
    else:
        x_sum = x
        x_max = x

    # Sum accumulates in f32 for accuracy; max stays in the input dtype and
    # only the (n_blk, C) reduced result is widened.
    sum_acc[...] += jnp.sum(x_sum.astype(jnp.float32), axis=-1)
    max_acc[...] = jnp.maximum(max_acc[...],
                               jnp.max(x_max, axis=-1).astype(jnp.float32))

    @pl.when(k == k_last)
    def _():
        pltpu.make_async_copy(w_hbm, w_vmem, w_sem).wait()
        avg = sum_acc[...] * (1.0 / hw_total)        # divide by global H*W
        mx = max_acc[...]
        w_avg = w_vmem[0].astype(jnp.float32)        # (C, C)
        w_max = w_vmem[1].astype(jnp.float32)        # (C, C)
        out = jnp.dot(avg, w_avg, preferred_element_type=jnp.float32)
        out = out + jnp.dot(mx, w_max, preferred_element_type=jnp.float32)
        out = out + b_ref[...].astype(jnp.float32)
        o_ref[...] = out.astype(o_ref.dtype)


def cam_forward(x_nchw, conv_weight, conv_bias, *, tile_hw=512, n_blk=None):
    """x_nchw: (N, C, H, W); conv_weight: (C, 2C, 1, 1); conv_bias: (C,)."""
    N, C, H, W = x_nchw.shape
    HW = H * W
    if n_blk is None:
        n_blk = min(N, 8)

    # Lane-aligned HW tile: multiple of 128, or the exact full extent.
    tile_hw = max(128, (tile_hw // 128) * 128)
    if HW % 128 == 0:
        tile_hw = min(tile_hw, HW)
    elif HW <= tile_hw:
        tile_hw = HW                      # single full-extent block, no padding
    # else: 128-multiple tiles; the partial last tile is masked in-kernel.

    x_flat = x_nchw.reshape(N, C, HW)                          # (N, C, HW)
    w2 = conv_weight.reshape(C, 2 * C)                         # (C_out, 2C_in)
    w_stack = jnp.stack([w2[:, :C].T, w2[:, C:].T], axis=0)    # (2, C_in, C_out)
    b_mat = conv_bias.reshape(1, C)

    grid = (pl.cdiv(N, n_blk), pl.cdiv(HW, tile_hw))

    # VMEM budget: 2x (double-buffered) x-tile + single-buffered weight + accs.
    x_item = jnp.dtype(x_nchw.dtype).itemsize
    w_item = jnp.dtype(conv_weight.dtype).itemsize
    vmem_needed = (2 * n_blk * C * tile_hw * x_item
                   + 2 * C * C * w_item
                   + 6 * n_blk * C * 4
                   + (1 << 20))
    vmem_limit = int(min(100 << 20, max(32 << 20, 2 * vmem_needed)))

    out = pl.pallas_call(
        functools.partial(cam_kernel, hw_total=HW),
        out_shape=jax.ShapeDtypeStruct((N, C), x_nchw.dtype),
        grid_spec=pltpu.PrefetchScalarGridSpec(
            num_scalar_prefetch=0,
            grid=grid,
            in_specs=[
                pl.BlockSpec((n_blk, C, tile_hw), lambda n, k: (n, 0, k)),
                pl.BlockSpec(memory_space=pl.ANY),      # weight stays in HBM
                pl.BlockSpec((1, C), lambda n, k: (0, 0)),
            ],
            out_specs=pl.BlockSpec((n_blk, C), lambda n, k: (n, 0)),
            scratch_shapes=[
                pltpu.VMEM((2, C, C), conv_weight.dtype),   # weight landing buf
                pltpu.SemaphoreType.DMA(()),                # weight DMA sem
                pltpu.VMEM((n_blk, C), jnp.float32),        # running sum
                pltpu.VMEM((n_blk, C), jnp.float32),        # running max
            ],
        ),
        compiler_params=pltpu.CompilerParams(
            dimension_semantics=("parallel", "arbitrary"),
            vmem_limit_bytes=vmem_limit,
        ),
    )(x_flat, w_stack, b_mat)

    return out.reshape(N, C, 1, 1)                             # PyTorch NCHW output


def _reference(x, conv_weight, conv_bias):
    N, C = x.shape[0], x.shape[1]
    avg_ref = jnp.mean(x, axis=(2, 3))
    max_ref = jnp.max(x, axis=(2, 3))
    feat = jnp.concatenate([avg_ref, max_ref], axis=-1)
    return (feat @ conv_weight.reshape(C, 2 * C).T + conv_bias).reshape(N, C, 1, 1)


if __name__ == "__main__":
    key = jax.random.PRNGKey(0)
    k_x, k_w, k_b, k_x2 = jax.random.split(key, 4)

    # Primary small test (HW multiple of 128 -> unmasked fast path).
    N, C, H, W = 2, 4, 16, 16
    x = jax.random.normal(k_x, (N, C, H, W), dtype=jnp.float32)
    conv_weight = jax.random.normal(k_w, (C, 2 * C, 1, 1), dtype=jnp.float32) * 0.1
    conv_bias = jax.random.normal(k_b, (C,), dtype=jnp.float32) * 0.1

    out = cam_forward(x, conv_weight, conv_bias)
    jax.block_until_ready(out)
    ref = _reference(x, conv_weight, conv_bias)
    assert jnp.allclose(out, ref, atol=1e-5, rtol=1e-5)

    # Second test exercises multi-step HW accumulation + remainder-tile masking
    # (HW = 24*24 = 576 -> two 512-wide tiles, last one partial).
    x2 = jax.random.normal(k_x2, (N, C, 24, 24), dtype=jnp.float32)
    out2 = cam_forward(x2, conv_weight, conv_bias)
    jax.block_until_ready(out2)
    ref2 = _reference(x2, conv_weight, conv_bias)
    assert jnp.allclose(out2, ref2, atol=1e-5, rtol=1e-5)

    print("KERNEL_OK")
</pallas_src>

<mosaic_0001>
module attributes {stable_mosaic.version = 11 : i64} {
  func.func @cam_kernel(%arg0: i32, %arg1: i32, %arg2: memref<2x4x256xf32, #tpu.memory_space<vmem>>, %arg3: memref<2x4x4xf32, #tpu.memory_space<any>>, %arg4: memref<1x4xf32, #tpu.memory_space<vmem>>, %arg5: memref<2x4xf32, #tpu.memory_space<vmem>>, %arg6: memref<2x4x4xf32, #tpu.memory_space<vmem>>, %arg7: memref<!tpu.dma_semaphore, #tpu.memory_space<semaphore_mem>>, %arg8: memref<2x4xf32, #tpu.memory_space<vmem>>, %arg9: memref<2x4xf32, #tpu.memory_space<vmem>>) attributes {dimension_semantics = [#tpu.dimension_semantics<parallel>, #tpu.dimension_semantics<arbitrary>], iteration_bounds = array<i64: 1, 1>, scalar_prefetch = 0 : i64, scratch_operands = 4 : i64, tpu.core_type = #tpu.core_type<tc>, window_params = [{transform_indices = @transform_0, window_bounds = array<i64: 2, 4, 256>}, {}, {pipeline_mode = #tpu.pipeline_mode<synchronous>, transform_indices = @transform_2, window_bounds = array<i64: 1, 4>}, {transform_indices = @transform_3, window_bounds = array<i64: 2, 4>}]} {
    %c0_i32 = arith.constant 0 : i32
    %0 = arith.cmpi eq, %arg1, %c0_i32 : i32
    %1 = arith.extui %0 : i1 to i32
    %c0_i32_0 = arith.constant 0 : i32
    %2 = arith.cmpi ne, %1, %c0_i32_0 : i32
    scf.if %2 {
      %cst_14 = arith.constant 0.000000e+00 : f32
      %15 = vector.broadcast %cst_14 : f32 to vector<2x4xf32>
      %c0_15 = arith.constant 0 : index
      %c0_16 = arith.constant 0 : index
      %16 = vector.load %arg8[%c0_15, %c0_16] : memref<2x4xf32, #tpu.memory_space<vmem>>, vector<2x4xf32>
      tpu.vector_store %arg8[%c0_15, %c0_16], %15 {strides = array<i32>} : memref<2x4xf32, #tpu.memory_space<vmem>>, vector<2x4xf32>,
      %cst_17 = arith.constant 0xFF800000 : f32
      %17 = vector.broadcast %cst_17 : f32 to vector<2x4xf32>
      %c0_18 = arith.constant 0 : index
      %c0_19 = arith.constant 0 : index
      %18 = vector.load %arg9[%c0_18, %c0_19] : memref<2x4xf32, #tpu.memory_space<vmem>>, vector<2x4xf32>
      tpu.vector_store %arg9[%c0_18, %c0_19], %17 {strides = array<i32>} : memref<2x4xf32, #tpu.memory_space<vmem>>, vector<2x4xf32>,
      tpu.enqueue_dma source(%arg3 : memref<2x4x4xf32, #tpu.memory_space<any>>) target(%arg6 : memref<2x4x4xf32, #tpu.memory_space<vmem>>) target_semaphore(%arg7 : memref<!tpu.dma_semaphore, #tpu.memory_space<semaphore_mem>>)
    } else {
    }
    %c0 = arith.constant 0 : index
    %c0_1 = arith.constant 0 : index
    %c0_2 = arith.constant 0 : index
    %3 = vector.load %arg2[%c0, %c0_1, %c0_2] : memref<2x4x256xf32, #tpu.memory_space<vmem>>, vector<2x4x256xf32>
    %c0_3 = arith.constant 0 : index
    %c0_4 = arith.constant 0 : index
    %4 = vector.load %arg8[%c0_3, %c0_4] : memref<2x4xf32, #tpu.memory_space<vmem>>, vector<2x4xf32>
    %cst = arith.constant dense<0.000000e+00> : vector<2x4xf32>
    %5 = vector.multi_reduction <add>, %3, %cst [2] : vector<2x4x256xf32> to vector<2x4xf32>
    %6 = arith.addf %4, %5 : vector<2x4xf32>
    %c0_5 = arith.constant 0 : index
    %c0_6 = arith.constant 0 : index
    %7 = vector.load %arg8[%c0_5, %c0_6] : memref<2x4xf32, #tpu.memory_space<vmem>>, vector<2x4xf32>
    tpu.vector_store %arg8[%c0_5, %c0_6], %6 {strides = array<i32>} : memref<2x4xf32, #tpu.memory_space<vmem>>, vector<2x4xf32>,
    %c0_7 = arith.constant 0 : index
    %c0_8 = arith.constant 0 : index
    %8 = vector.load %arg9[%c0_7, %c0_8] : memref<2x4xf32, #tpu.memory_space<vmem>>, vector<2x4xf32>
    %cst_9 = arith.constant dense<0xFF800000> : vector<2x4xf32>
    %9 = vector.multi_reduction <maximumf>, %3, %cst_9 [2] : vector<2x4x256xf32> to vector<2x4xf32>
    %10 = arith.maximumf %8, %9 : vector<2x4xf32>
    %c0_10 = arith.constant 0 : index
    %c0_11 = arith.constant 0 : index
    %11 = vector.load %arg9[%c0_10, %c0_11] : memref<2x4xf32, #tpu.memory_space<vmem>>, vector<2x4xf32>
    tpu.vector_store %arg9[%c0_10, %c0_11], %10 {strides = array<i32>} : memref<2x4xf32, #tpu.memory_space<vmem>>, vector<2x4xf32>,
    %c0_i32_12 = arith.constant 0 : i32
    %12 = arith.cmpi eq, %arg1, %c0_i32_12 : i32
    %13 = arith.extui %12 : i1 to i32
    %c0_i32_13 = arith.constant 0 : i32
    %14 = arith.cmpi ne, %13, %c0_i32_13 : i32
    scf.if %14 {
      tpu.wait_dma2 semaphore(%arg7 : memref<!tpu.dma_semaphore, #tpu.memory_space<semaphore_mem>>) src(%arg3 : memref<2x4x4xf32, #tpu.memory_space<any>>) dst(%arg6 : memref<2x4x4xf32, #tpu.memory_space<vmem>>)
      %c0_14 = arith.constant 0 : index
      %c0_15 = arith.constant 0 : index
      %15 = vector.load %arg8[%c0_14, %c0_15] : memref<2x4xf32, #tpu.memory_space<vmem>>, vector<2x4xf32>
      %cst_16 = arith.constant 3.906250e-03 : f32
      %16 = vector.broadcast %cst_16 : f32 to vector<2x4xf32>
      %17 = arith.mulf %15, %16 : vector<2x4xf32>
      %c0_17 = arith.constant 0 : index
      %c0_18 = arith.constant 0 : index
      %18 = vector.load %arg9[%c0_17, %c0_18] : memref<2x4xf32, #tpu.memory_space<vmem>>, vector<2x4xf32>
      %c0_19 = arith.constant 0 : index
      %c0_20 = arith.constant 0 : index
      %c0_21 = arith.constant 0 : index
      %19 = vector.load %arg6[%c0_19, %c0_20, %c0_21] : memref<2x4x4xf32, #tpu.memory_space<vmem>>, vector<1x4x4xf32>
      %20 = vector.shape_cast %19 : vector<1x4x4xf32> to vector<4x4xf32>
      %c1 = arith.constant 1 : index
      %c0_22 = arith.constant 0 : index
      %c0_23 = arith.constant 0 : index
      %21 = vector.load %arg6[%c1, %c0_22, %c0_23] : memref<2x4x4xf32, #tpu.memory_space<vmem>>, vector<1x4x4xf32>
      %22 = vector.shape_cast %21 : vector<1x4x4xf32> to vector<4x4xf32>
      %cst_24 = arith.constant dense<0.000000e+00> : vector<2x4xf32>
      %23 = tpu.matmul %17, %20, %cst_24 {dimension_numbers = #tpu.dot_dimension_numbers<[1], [0], [0], [1], [0, 0, 1, 1], [], []>} : vector<2x4xf32>, vector<4x4xf32>, vector<2x4xf32> -> vector<2x4xf32>
      %cst_25 = arith.constant dense<0.000000e+00> : vector<2x4xf32>
      %24 = tpu.matmul %18, %22, %cst_25 {dimension_numbers = #tpu.dot_dimension_numbers<[1], [0], [0], [1], [0, 0, 1, 1], [], []>} : vector<2x4xf32>, vector<4x4xf32>, vector<2x4xf32> -> vector<2x4xf32>
      %25 = arith.addf %23, %24 : vector<2x4xf32>
      %c0_26 = arith.constant 0 : index
      %c0_27 = arith.constant 0 : index
      %26 = vector.load %arg4[%c0_26, %c0_27] : memref<1x4xf32, #tpu.memory_space<vmem>>, vector<1x4xf32>
      %27 = vector.broadcast %26 : vector<1x4xf32> to vector<2x4xf32>
      %28 = arith.addf %25, %27 : vector<2x4xf32>
      %c0_28 = arith.constant 0 : index
      %c0_29 = arith.constant 0 : index
      %29 = vector.load %arg5[%c0_28, %c0_29] : memref<2x4xf32, #tpu.memory_space<vmem>>, vector<2x4xf32>
      tpu.vector_store %arg5[%c0_28, %c0_29], %28 {strides = array<i32>} : memref<2x4xf32, #tpu.memory_space<vmem>>, vector<2x4xf32>,
    } else {
    }
    return
  }
  func.func @transform_0(%arg0: i32, %arg1: i32) -> (i32, i32, i32) {
    %c0_i32 = arith.constant 0 : i32
    %c0_i32_0 = arith.constant 0 : i32
    return %arg0, %c0_i32, %arg1 : i32, i32, i32
  }
  func.func @transform_2(%arg0: i32, %arg1: i32) -> (i32, i32) {
    %c0_i32 = arith.constant 0 : i32
    %c0_i32_0 = arith.constant 0 : i32
    %c0_i32_1 = arith.constant 0 : i32
    return %c0_i32, %c0_i32_0 : i32, i32
  }
  func.func @transform_3(%arg0: i32, %arg1: i32) -> (i32, i32) {
    %c0_i32 = arith.constant 0 : i32
    %c0_i32_0 = arith.constant 0 : i32
    return %arg0, %c0_i32 : i32, i32
  }
}

</mosaic_0001>

<bundles_post_ra>
// kernel: tpu_custom_call.1
= control target key start
LH: loop header
LB: loop body
LE: loop exit
PB: predicated region body
PF: predicated region fallthrough
CT: control target
= control target key end

     0   :  { %8 = vsyncpa [#allocation7], 0  ;;  %s455_s0 = inlined_call_operand.hbm [shape: f32[2,4,256], index: 0, kind: input, shape index: {}]   ;;  %s456_s1 = inlined_call_operand.hbm [shape: f32[2,4,4], index: 1, kind: input, shape index: {}]   ;;  %s457_s2 = inlined_call_operand.vmem [shape: f32[1,4], index: 2, kind: input, shape index: {}]   ;;  %s458_s3 = inlined_call_operand.hbm [shape: f32[2,4], index: 3, kind: output, shape index: {}]  }
   0x1   :  { %9 = vsyncpa [#allocation8], 0  ;;  %s400_s12 = smov [#allocation6]  }
   0x2   :  { %s15_s13 = sshll.u32 %s400_s12, 4  ;;  %s16_s13 = int_to_ptr.vmem [resolvable:$true] %s15_s13 }
   0x3   :  { %s342_s14 = scalar_lea.vmem %s16_s13, 256  ;;  %p347_p1 = scmp.lt.s32.totalorder %s16_s13, %s16_s13 }
   0x4   :  { %p343_p0 = scmp.ne.s32.totalorder %s16_s13, %s342_s14  ;;  %p348_p2 = scmp.lt.s32.totalorder %s342_s14, %s342_s14 }
   0x6   :  { %p349_p3 = por %p348_p2, %p347_p1 }
   0x8   :  { %p350_p4 = pnand %p349_p3, %p343_p0 }
   0xa   :  { %353 = shalt.err (!%p350_p4)
}
   0xb   :  { %s401_s15 = smov 128   ;;  %s402_s16 = smov 8  }
   0xc   :  { %21 = dma.hbm_to_vmem [thread:$0]  %s455_s0, 256, %s16_s13, [#allocation7], %s401_s15, %s401_s15, %s402_s16  }
   0xd   :  { %394 = dma.done.wait [#allocation7], 256  }
   0xe   :  { %395 = vsyncadd [#allocation7], 4294967040  ;;  %vm54_vm0 = vcmask 1043456   ;;  %v45_v0 = vld [vmem:[#allocation6] sm:$0xff]  ;;  %v46_v1 = vld [vmem:[#allocation6 + $0x8] sm:$0xff]  ;;  %vm31_vm1 = vcmask 25600  }
   0xf   :  { %v50_v2 = vcombine.high %v45_v0, %v45_v0  ;;  %v84_v3 = vsel %vm54_vm0, %v45_v0, -inf  ;;  %v55_v4 = vsel %vm54_vm0, %v45_v0, 0.0  ;;  %v51_v5 = vcombine.high %v46_v1, %v46_v1  ;;  %s405_s0 = smov [#allocation2]  }
  0x10   :  { %v89_v6 = vsel %vm54_vm0, %v46_v1, -inf  ;;  %v60_v7 = vsel %vm54_vm0, %v46_v1, 0.0  ;;  %v403_v16 = vmov -inf   ;;  %v404_v17 = vmov 0.0   ;;  %s41_s19 = sshll.u32 %s405_s0, 4  ;;  %s42_s19 = int_to_ptr.vmem [resolvable:$true] %s41_s19 }
  0x11   :  { %v85_v8 = vsel %vm54_vm0, %v50_v2, -inf  ;;  %v56_v9 = vsel %vm54_vm0, %v50_v2, 0.0  ;;  %v90_v10 = vsel %vm54_vm0, %v51_v5, -inf  ;;  %v61_v11 = vsel %vm54_vm0, %v51_v5, 0.0  ;;  %33 = vst.msk [vmem:[#allocation5] sm:$0x3] %vm31_vm1, %v403_v16  ;;  %p367_p6 = scmp.lt.s32.totalorder %s42_s19, %s42_s19 }
  0x12   :  { %v86_v12 = vmax.f32 %v84_v3, %v85_v8  ;;  %v57_v13 = vadd.f32 %v56_v9, %v55_v4  ;;  %v91_v14 = vmax.f32 %v89_v6, %v90_v10  ;;  %v62_v15 = vadd.f32 %v61_v11, %v60_v7  ;;  %32 = vst.msk [vmem:[#allocation4] sm:$0x3] %vm31_vm1, %v404_v17  ;;  %s362_s20 = scalar_lea.vmem %s42_s19, 128 }
  0x13   :  { %p363_p5 = scmp.ne.s32.totalorder %s42_s19, %s362_s20  ;;  %p368_p7 = scmp.lt.s32.totalorder %s362_s20, %s362_s20 }
  0x14   :  { %87 = vmax.xlane.f32.xlu1 %v86_v12  ;;  %58 = vadd.xlane.f32.xlu0 %v57_v13 }
  0x15   :  { %p369_p8 = por %p368_p7, %p367_p6 }
  0x17   :  { %p370_p9 = pnand %p369_p8, %p363_p5 }
  0x18   :  { %92 = vmax.xlane.f32.xlu1 %v91_v14  ;;  %63 = vadd.xlane.f32.xlu0 %v62_v15 }
  0x19   :  { %373 = shalt.err (!%p370_p9)  }
  0x1a   :  { %44 = dma.hbm_to_vmem [thread:$0]  %s456_s1, 128, %s42_s19, [#allocation3]  ;;  %v67_v18 = vlaneseq  ;;  %vm77_vm2 = vcmask 1041409   ;;  %v83_v28 = vld [vmem:[#allocation5] sm:$0x3] }
  0x1b   :  { %v47_v30 = vld [vmem:[#allocation4] sm:$0x3] }
  0x1c   :  { %v68_v19 = vand.u32 127, %v67_v18  ;;  %v70_v20 = vshrl.u32 %v67_v18, 7 }
  0x1e   :  { %v71_v23 = vsub.s32 %v68_v19, %v70_v20 }
  0x9d   :  { %v88_v21 = vpop.xlane.xlu1 %87  ;;  %v59_v22 = vpop.xlane.xlu0 %58 }
  0x9e   :  { %v99_v26 = vrot.slane %v88_v21, %v71_v23  ;;  %v72_v27 = vrot.slane %v59_v22, %v71_v23 }
  0xa1   :  { %v93_v24 = vpop.xlane.xlu1 %92  ;;  %v64_v25 = vpop.xlane.xlu0 %63 }
  0xa2   :  { %v103_v29 = vrot.slane %v93_v24, %v71_v23  ;;  %v76_v31 = vrot.slane %v64_v25, %v71_v23 }
  0xa4   :  { %v104_v32 = vsel %vm77_vm2, %v103_v29, %v99_v26  ;;  %v78_v33 = vsel %vm77_vm2, %v76_v31, %v72_v27 }
  0xa5   :  { %v106_v34 = vmax.f32 %v83_v28, %v104_v32  ;;  %v80_v35 = vadd.f32 %v78_v33, %v47_v30 }
  0xa7   :  { %107 = vst.msk [vmem:[#allocation5] sm:$0x3] %vm31_vm1, %v106_v34  ;;  %82 = vst.msk [vmem:[#allocation4] sm:$0x3] %vm31_vm1, %v80_v35 }
  0xa8   :  { %396 = dma.done.wait [#allocation3], 128 }
  0xa9   :  { %397 = vsyncadd [#allocation3], 4294967168  ;;  %314 = vmatprep.subr.mxu0 %v404_v17  ;;  %319 = vmatprep.subr.mxu1 %v404_v17  ;;  %vm406_vm3 = vmmov 0   ;;  %vm121_vm4 = vcmask 31744   ;;  %v120_v36 = vld [vmem:[#allocation2 + $0x4] sm:$0xf] }
  0xaa   :  { %316 = vmatprep.mubr.msk.f32.mxu0 %vm406_vm3, %v404_v17  ;;  %321 = vmatprep.mubr.msk.f32.mxu1 %vm406_vm3, %v404_v17  ;;  %v118_v38 = vld [vmem:[#allocation2] sm:$0xf]  ;;  %s407_s24 = smov [#allocation9]  }
  0xab   :  { %315 = vmatpush3.msk.msra.mxu0 %vm54_vm0, %v120_v36  ;;  %320 = vmatpush3.msk.msra.mxu1 %vm54_vm0, %v118_v38  ;;  %v308_v43 = vld [vmem:[%s457_s2] ss:$0 sm:$0xff]  ;;  %s289_s25 = sshll.u32 %s407_s24, 4  ;;  %s290_s25 = int_to_ptr.vmem [resolvable:$true] %s289_s25 }
  0xac   :  { %s374_s26 = scalar_lea.vmem %s290_s25, 32  ;;  %p379_p11 = scmp.lt.s32.totalorder %s290_s25, %s290_s25 }
  0xad   :  { %p375_p10 = scmp.ne.s32.totalorder %s290_s25, %s374_s26  ;;  %p380_p12 = scmp.lt.s32.totalorder %s374_s26, %s374_s26 }
  0xae   :  { %v117_v37 = vld [vmem:[#allocation5] sm:$0x3]  ;;  %v115_v39 = vld [vmem:[#allocation4] sm:$0x3] }
  0xaf   :  { %317 = vmatmul.mubr.msk.f32.vlgmr.msra.gmra.mxu0 %vm121_vm4, %v117_v37  ;;  %v116_v40 = vmul.f32 0.00390625, %v115_v39  ;;  %p381_p13 = por %p380_p12, %p379_p11 }
  0xb1   :  { %322 = vmatmul.mubr.msk.f32.vlgmr.msra.gmra.mxu1 %vm121_vm4, %v116_v40  ;;  %p382_p0 = pnand %p381_p13, %p375_p10 }
 0x16f   :  { %v194_v41 = vpop.f32.mrf.mxu0 }
 0x171   :  { %v270_v42 = vpop.f32.mrf.mxu1  ;;  %v318_v44 = vpop.f32.mrf.mxu0 }
 0x172   :  { %v271_v45 = vadd.f32 %v270_v42, %v194_v41 }
 0x173   :  { %v323_v46 = vpop.f32.mrf.mxu1 }
 0x174   :  { %v281_v47 = vadd.f32 %v308_v43, %v271_v45 }
 0x176   :  { %282 = vst.msk [vmem:[#allocation9] sm:$0x3] %vm31_vm1, %v281_v47 }
 0x177   :  { %385 = shalt.err (!%p382_p0)
}
 0x178   :  { %292 = dma.vmem_to_hbm [thread:$0]  %s290_s25, 32, %s458_s3, [#allocation8]  }
 0x179   :  { %398 = dma.done.wait [#allocation8], 32  }
 0x17a   :  { %399 = vsyncadd [#allocation8], 4294967264 }
 0x17b   :  { %296 = vsyncpa [#allocation7], 1 }
 0x17c   :  { %297 = vsyncpa [#allocation8], 1 }
 0x17d   :  { %298 = vsyncmov [#allocation3] }
 0x180   :  { %s299_s2 = vpop.sfrf %298 }
 0x181   :  { %p309_p1 = scmp.ne.s32.totalorder %s299_s2, 0 }
 0x183   :  { %303 = shalt.err (%p309_p1)  }

</bundles_post_ra>
